<compile_context>
chip_gen: v7x
topology: tpu7x:2x2x1
jax: 0.10.0
libtpu: 0.0.40
codegen_flags: <defaults>
</compile_context>

<pallas_src>
import functools

import jax
import jax.numpy as jnp
from jax.experimental import pallas as pl
from jax.experimental.pallas import tpu as pltpu


# ----------------------------------------------------------------------------
# Helpers
# ----------------------------------------------------------------------------
def _round_up(x, m):
    return ((x + m - 1) // m) * m


def _pad_to(x, shape):
    pads = [(0, s - d) for d, s in zip(x.shape, shape)]
    if all(p == (0, 0) for p in pads):
        return x
    return jnp.pad(x, pads)


def _pick_tiles(M, K, N):
    Mp = _round_up(max(M, 8), 128)
    if Mp >= 512 and Mp % 512 == 0:
        tm = 512
    elif Mp >= 256 and Mp % 256 == 0:
        tm = 256
    else:
        tm = 128
    Np = _round_up(N, 128)
    tn = 256 if (Np >= 256 and Np % 256 == 0) else 128
    Kp = _round_up(K, 128)
    if Kp <= 2560:
        tk = Kp                      # single K step -> no revisits, few grid steps
    elif Kp % 512 == 0:
        tk = 512
    elif Kp % 256 == 0:
        tk = 256
    else:
        tk = 128
    return Mp, Np, Kp, tm, tn, tk


# ----------------------------------------------------------------------------
# Pallas kernel 1: grouped / batched matmul with fused bias + act + scale.
# bf16 operands feed the MXU; accumulation is f32 in VMEM scratch.
# Epilogue order matches PyTorch: (acc + bias) -> activation -> * scale.
# ----------------------------------------------------------------------------
def _bmm_kernel(a_ref, b_ref, bias_ref, o_ref, acc_ref, *, activation, scale):
    @pl.when(pl.program_id(3) == 0)
    def _():
        acc_ref[...] = jnp.zeros_like(acc_ref)

    acc_ref[...] += jnp.dot(a_ref[0], b_ref[0],
                            preferred_element_type=jnp.float32)

    @pl.when(pl.program_id(3) == pl.num_programs(3) - 1)
    def _():
        r = acc_ref[...] + bias_ref[0]
        if activation == "relu":
            r = jnp.maximum(r, 0.0)
        elif activation == "sigmoid":
            r = jax.nn.sigmoid(r)
        elif activation == "tanh":
            r = jnp.tanh(r)
        if scale != 1.0:
            r = r * scale
        o_ref[0] = r.astype(o_ref.dtype)


@functools.partial(jax.jit, static_argnames=("activation", "out_dtype", "scale"))
def grouped_matmul(a, wm, bias, activation=None, out_dtype=jnp.float32,
                   scale=1.0):
    """a: (G, M, K); wm: (Gw, K, N) [Gw == G or 1]; bias: (Gw, N)."""
    G, M, K = a.shape
    Gw, _, N = wm.shape
    Mp, Np, Kp, tm, tn, tk = _pick_tiles(M, K, N)

    a_p = _pad_to(a.astype(jnp.bfloat16), (G, Mp, Kp))
    w_p = _pad_to(wm.astype(jnp.bfloat16), (Gw, Kp, Np))
    b_p = _pad_to(bias.astype(jnp.float32), (Gw, Np)).reshape(Gw, 1, Np)

    def wg(g):
        return g if Gw > 1 else 0

    grid = (G, Mp // tm, Np // tn, Kp // tk)
    out = pl.pallas_call(
        functools.partial(_bmm_kernel, activation=activation, scale=scale),
        out_shape=jax.ShapeDtypeStruct((G, Mp, Np), out_dtype),
        grid_spec=pltpu.PrefetchScalarGridSpec(
            num_scalar_prefetch=0,
            grid=grid,
            in_specs=[
                pl.BlockSpec((1, tm, tk), lambda g, i, j, k: (g, i, k)),
                pl.BlockSpec((1, tk, tn), lambda g, i, j, k: (wg(g), k, j)),
                pl.BlockSpec((1, 1, tn), lambda g, i, j, k: (wg(g), 0, j)),
            ],
            out_specs=pl.BlockSpec((1, tm, tn), lambda g, i, j, k: (g, i, j)),
            scratch_shapes=[pltpu.VMEM((tm, tn), jnp.float32)],
        ),
        compiler_params=pltpu.CompilerParams(
            dimension_semantics=("parallel", "parallel", "parallel",
                                 "arbitrary")),
    )(a_p, w_p, b_p)
    return out[:, :M, :N]


# ----------------------------------------------------------------------------
# Pallas kernel 2: convex-combination flow upsampling (softmax over 9 taps).
# Single call over (layer*batch, lane-dense HW tiles).
# ----------------------------------------------------------------------------
def _convex_up_kernel(mask_ref, flow_ref, out_ref):
    m = mask_ref[0]                                 # (9, 64, T)
    m = m - jnp.max(m, axis=0, keepdims=True)
    e = jnp.exp(m)
    p = e / jnp.sum(e, axis=0, keepdims=True)
    f = flow_ref[0]                                 # (C, 9, T)
    acc = jnp.zeros(out_ref.shape[1:], jnp.float32)  # (C, 64, T)
    for k in range(9):                              # static unroll (VPU)
        acc = acc + p[k][None, :, :] * f[:, k][:, None, :]
    out_ref[0] = acc


def upsample_flow_multi(flow, mask):
    """flow (L,N,2,H,W), mask (L,N,576,H,W) -> (L,N,2,8H,8W)."""
    L, N, C, H, W = flow.shape
    HW = H * W
    LN = L * N
    mask_r = mask.reshape(LN, 9, 64, HW).astype(jnp.float32)
    fl = (8.0 * flow).reshape(LN, C, H, W).astype(jnp.float32)
    flp = jnp.pad(fl, ((0, 0), (0, 0), (1, 1), (1, 1)))
    taps = [flp[:, :, i:i + H, j:j + W] for i in range(3) for j in range(3)]
    up = jnp.stack(taps, axis=2).reshape(LN, C, 9, HW)

    HWp = _round_up(HW, 128)
    if HWp % 512 == 0:
        t_hw = 512
    elif HWp % 256 == 0:
        t_hw = 256
    else:
        t_hw = 128
    mask_p = _pad_to(mask_r, (LN, 9, 64, HWp))
    up_p = _pad_to(up, (LN, C, 9, HWp))

    out = pl.pallas_call(
        _convex_up_kernel,
        out_shape=jax.ShapeDtypeStruct((LN, C, 64, HWp), jnp.float32),
        grid=(LN, HWp // t_hw),
        in_specs=[
            pl.BlockSpec((1, 9, 64, t_hw), lambda b, t: (b, 0, 0, t)),
            pl.BlockSpec((1, C, 9, t_hw), lambda b, t: (b, 0, 0, t)),
        ],
        out_specs=pl.BlockSpec((1, C, 64, t_hw), lambda b, t: (b, 0, 0, t)),
        compiler_params=pltpu.CompilerParams(
            dimension_semantics=("parallel", "parallel")),
    )(mask_p, up_p)

    out = out[..., :HW].reshape(L, N, C, 8, 8, H, W)
    out = out.transpose(0, 1, 2, 5, 3, 6, 4)        # (L,N,C,H,8,W,8)
    return out.reshape(L, N, C, 8 * H, 8 * W)


# ----------------------------------------------------------------------------
# Conv2d = im2col (bf16) + grouped Pallas matmul.
# ----------------------------------------------------------------------------
def conv2d_g(x, p, stride=1, padding=0, activation=None,
             out_dtype=jnp.float32, scale=1.0):
    """x: (G, B, C, H, W); p['wm']: (Gw, C*kh*kw, Cout), p['b']: (Gw, Cout)."""
    if isinstance(stride, int):
        stride = (stride, stride)
    if isinstance(padding, int):
        padding = (padding, padding)
    G, B, C, H, W = x.shape
    kh, kw = p["kh"], p["kw"]
    xb = x.astype(jnp.bfloat16)
    xp = jnp.pad(xb, ((0, 0), (0, 0), (0, 0),
                      (padding[0], padding[0]), (padding[1], padding[1])))
    Ho = (H + 2 * padding[0] - kh) // stride[0] + 1
    Wo = (W + 2 * padding[1] - kw) // stride[1] + 1
    taps = []
    for i in range(kh):
        for j in range(kw):
            taps.append(xp[:, :, :,
                           i:i + stride[0] * (Ho - 1) + 1:stride[0],
                           j:j + stride[1] * (Wo - 1) + 1:stride[1]])
    patches = jnp.stack(taps, axis=3)                # (G,B,C,khkw,Ho,Wo)
    patches = patches.transpose(0, 1, 4, 5, 2, 3).reshape(
        G, B * Ho * Wo, C * kh * kw)
    out = grouped_matmul(patches, p["wm"], p["b"],
                         activation=activation, out_dtype=out_dtype,
                         scale=scale)
    Cout = p["wm"].shape[-1]
    return out.reshape(G, B, Ho, Wo, Cout).transpose(0, 1, 4, 2, 3)


def conv2d_e(x, p, stride=1, padding=0, activation=None,
             out_dtype=jnp.float32):
    """Plain (non-grouped) conv on (B, C, H, W)."""
    return conv2d_g(x[None], p, stride=stride, padding=padding,
                    activation=activation, out_dtype=out_dtype)[0]


def instance_norm(x, eps=1e-5):
    x = x.astype(jnp.float32)
    mean = x.mean(axis=(2, 3), keepdims=True)
    var = x.var(axis=(2, 3), keepdims=True)
    return (x - mean) / jnp.sqrt(var + eps)


def batch_norm(x, eps=1e-5):
    x = x.astype(jnp.float32)
    mean = x.mean(axis=(0, 2, 3), keepdims=True)
    var = x.var(axis=(0, 2, 3), keepdims=True)
    return (x - mean) / jnp.sqrt(var + eps)


def apply_norm(norm_fn, x):
    if norm_fn == "instance":
        return instance_norm(x)
    if norm_fn == "batch":
        return batch_norm(x)
    return x


# ----------------------------------------------------------------------------
# Deterministic parameter init (weights pre-reshaped to (K, Cout) and bf16).
# ----------------------------------------------------------------------------
class KeyGen:
    def __init__(self, seed=0):
        self.key = jax.random.PRNGKey(seed)
        self.i = 0

    def __call__(self):
        self.i += 1
        return jax.random.fold_in(self.key, self.i)


def conv_p(kg, cin, cout, kh, kw, groups=1, scale=0.05):
    k = cin * kh * kw
    wm = scale * jax.random.normal(kg(), (groups, k, cout), jnp.float32)
    b = scale * jax.random.normal(kg(), (groups, cout), jnp.float32)
    return {"wm": wm.astype(jnp.bfloat16), "b": b, "kh": kh, "kw": kw}


def fuse_conv_p(ps):
    """Concatenate same-input convs along the output-channel axis."""
    return {"wm": jnp.concatenate([p["wm"] for p in ps], axis=-1),
            "b": jnp.concatenate([p["b"] for p in ps], axis=-1),
            "kh": ps[0]["kh"], "kw": ps[0]["kw"]}


# ----------------------------------------------------------------------------
# BasicEncoder
# ----------------------------------------------------------------------------
def make_res_block(kg, cin, cout, stride):
    p = {"conv1": conv_p(kg, cin, cout, 3, 3),
         "conv2": conv_p(kg, cout, cout, 3, 3),
         "stride": stride}
    if stride != 1:
        p["down"] = conv_p(kg, cin, cout, 1, 1)
    return p


def residual_block(p, x, norm_fn):
    y = conv2d_e(x, p["conv1"], stride=p["stride"], padding=1)
    y = jax.nn.relu(apply_norm(norm_fn, y))
    y = conv2d_e(y, p["conv2"], stride=1, padding=1)
    y = jax.nn.relu(apply_norm(norm_fn, y))
    if "down" in p:
        x = apply_norm(norm_fn, conv2d_e(x, p["down"], stride=p["stride"],
                                         padding=0))
    return jax.nn.relu(x + y)


def make_basic_encoder(kg, output_dim):
    return {
        "conv1": conv_p(kg, 3, 64, 7, 7),
        "layer1": [make_res_block(kg, 64, 64, 1), make_res_block(kg, 64, 64, 1)],
        "layer2": [make_res_block(kg, 64, 96, 2), make_res_block(kg, 96, 96, 1)],
        "layer3": [make_res_block(kg, 96, 128, 2), make_res_block(kg, 128, 128, 1)],
        "conv2": conv_p(kg, 128, output_dim, 1, 1),
    }


def basic_encoder(p, x, norm_fn):
    is_list = isinstance(x, (list, tuple))
    if is_list:
        bd = x[0].shape[0]
        x = jnp.concatenate(x, axis=0)
    x = conv2d_e(x, p["conv1"], stride=2, padding=3)
    x = jax.nn.relu(apply_norm(norm_fn, x))
    for blk in p["layer1"] + p["layer2"] + p["layer3"]:
        x = residual_block(blk, x, norm_fn)
    x = conv2d_e(x, p["conv2"])
    if is_list:
        return x[:bd], x[bd:]
    return x


# ----------------------------------------------------------------------------
# Correlation pyramid (batched matmul with fused 1/sqrt(D) scale) + lookup.
# ----------------------------------------------------------------------------
def avg_pool2(x):
    N, C, H, W = x.shape
    return x.reshape(N, C, H // 2, 2, W // 2, 2).mean(axis=(3, 5))


def build_corr_pyramid(fmap1, fmap2, num_levels=4):
    B, D, H, W = fmap1.shape
    HW = H * W
    f1 = fmap1.reshape(B, D, HW).transpose(0, 2, 1)   # (B, HW, D)
    f2 = fmap2.reshape(B, D, HW)                      # (B, D, HW)
    zeros_b = jnp.zeros((B, HW), jnp.float32)
    corr = grouped_matmul(f1, f2, zeros_b, activation=None,
                          out_dtype=jnp.float32,
                          scale=float(1.0 / (D ** 0.5)))
    corr = corr.reshape(B * HW, 1, H, W)
    pyramid = [corr]
    for _ in range(num_levels - 1):
        corr = avg_pool2(corr)
        pyramid.append(corr)
    return pyramid


def corr_lookup_multi(pyramid, coordsL, radius, shared_pyramid):
    """Windowed bilinear lookup; one fused gather per level across all layers.

    TODO(synk): data-dependent gather stays in JAX (take_along_axis); a Pallas
    scalar-prefetch / DMA-gather version would need per-pixel page indices.
    """
    L, N, _, H, W = coordsL.shape
    r = radius
    n = 2 * r + 1
    win = n + 1
    P = N * H * W
    cx = coordsL[:, :, 0].reshape(L, P)
    cy = coordsL[:, :, 1].reshape(L, P)
    off = jnp.arange(win, dtype=jnp.int32)
    outs = []
    for lvl, corr in enumerate(pyramid):
        Hl, Wl = corr.shape[-2:]
        sc = 1.0 / (2.0 ** lvl)
        px = cx * sc
        py = cy * sc
        fx = jnp.floor(px)
        fy = jnp.floor(py)
        ax = (px - fx)[..., None, None]
        ay = (py - fy)[..., None, None]
        fyi = fy.astype(jnp.int32) - r
        fxi = fx.astype(jnp.int32) - r
        wy = fyi[:, :, None, None] + off[None, None, :, None]   # (L,P,win,1)
        wx = fxi[:, :, None, None] + off[None, None, None, :]   # (L,P,1,win)
        valid = (wy >= 0) & (wy <= Hl - 1) & (wx >= 0) & (wx <= Wl - 1)
        idx = jnp.clip(wy, 0, Hl - 1) * Wl + jnp.clip(wx, 0, Wl - 1)
        flat = corr.reshape(-1, Hl * Wl)             # (P,HW) or (L*P,HW)
        if shared_pyramid:
            idx_g = idx.transpose(1, 0, 2, 3).reshape(P, L * win * win)
            Wv = jnp.take_along_axis(flat, idx_g, axis=1)
            Wv = Wv.reshape(P, L, win, win).transpose(1, 0, 2, 3)
        else:
            idx_g = idx.reshape(L * P, win * win)
            Wv = jnp.take_along_axis(flat, idx_g, axis=1)
            Wv = Wv.reshape(L, P, win, win)
        Wv = Wv * valid.astype(Wv.dtype)
        # Bilinear weights are shared across the (2r+1)^2 integer taps.
        wa = (1 - ax) * (1 - ay)
        wb = (1 - ax) * ay
        wc = ax * (1 - ay)
        wd = ax * ay
        comb = (wa * Wv[..., :n, :n] + wb * Wv[..., 1:, :n]
                + wc * Wv[..., :n, 1:] + wd * Wv[..., 1:, 1:])
        # Output tap (i, j): delta[i] added to x, delta[j] added to y (RAFT's
        # ordering quirk); window rows index y -> transpose the last two axes.
        taps = comb.transpose(0, 1, 3, 2).reshape(L, N, H, W, n * n)
        outs.append(taps)
    out = jnp.concatenate(outs, axis=-1)             # (L,N,H,W,levels*81)
    return out.transpose(0, 1, 4, 2, 3).astype(jnp.float32)


def coords_grid(batch, ht, wd):
    ys, xs = jnp.meshgrid(jnp.arange(ht), jnp.arange(wd), indexing="ij")
    coords = jnp.stack([xs, ys], axis=0).astype(jnp.float32)   # ch0=x, ch1=y
    return jnp.broadcast_to(coords[None], (batch, 2, ht, wd))


# ----------------------------------------------------------------------------
# BasicUpdateBlock (grouped over the 4 layers; z/r and fh1/mask1 convs fused).
# ----------------------------------------------------------------------------
def make_update_block_params(kg, groups, hdim=128, corr_levels=4,
                             corr_radius=4):
    cor_planes = corr_levels * (2 * corr_radius + 1) ** 2
    gin = hdim + (128 + hdim)
    p = {
        "convc1": conv_p(kg, cor_planes, 256, 1, 1, groups),
        "convc2": conv_p(kg, 256, 192, 3, 3, groups),
        "convf1": conv_p(kg, 2, 128, 7, 7, groups),
        "convf2": conv_p(kg, 128, 64, 3, 3, groups),
        "conv":   conv_p(kg, 64 + 192, 128 - 2, 3, 3, groups),
        "convq1": conv_p(kg, gin, hdim, 1, 5, groups),
        "convq2": conv_p(kg, gin, hdim, 5, 1, groups),
        "fh_conv2": conv_p(kg, 256, 2, 3, 3, groups),
        "mask2": conv_p(kg, 256, 64 * 9, 1, 1, groups),
    }
    convz1 = conv_p(kg, gin, hdim, 1, 5, groups)
    convr1 = conv_p(kg, gin, hdim, 1, 5, groups)
    convz2 = conv_p(kg, gin, hdim, 5, 1, groups)
    convr2 = conv_p(kg, gin, hdim, 5, 1, groups)
    p["convzr1"] = fuse_conv_p([convz1, convr1])
    p["convzr2"] = fuse_conv_p([convz2, convr2])
    fh1 = conv_p(kg, hdim, 256, 3, 3, groups)
    mask1 = conv_p(kg, 128, 256, 3, 3, groups)
    p["fh_mask1"] = fuse_conv_p([fh1, mask1])
    return p


def basic_update_block_g(p, net, inp, corr, flow, hdim):
    bf = jnp.bfloat16
    # --- BasicMotionEncoder (intermediates in bf16; they only feed convs)
    cor = conv2d_g(corr, p["convc1"], padding=0, activation="relu", out_dtype=bf)
    cor = conv2d_g(cor, p["convc2"], padding=1, activation="relu", out_dtype=bf)
    flo = conv2d_g(flow, p["convf1"], padding=3, activation="relu", out_dtype=bf)
    flo = conv2d_g(flo, p["convf2"], padding=1, activation="relu", out_dtype=bf)
    cor_flo = jnp.concatenate([cor, flo], axis=2)
    mot = conv2d_g(cor_flo, p["conv"], padding=1, activation="relu", out_dtype=bf)
    motion_features = jnp.concatenate([mot, flow.astype(bf)], axis=2)
    x = jnp.concatenate([inp.astype(bf), motion_features], axis=2)

    # --- SepConvGRU, horizontal pass (1x5); z and r fused into one conv
    hx = jnp.concatenate([net.astype(bf), x], axis=2)
    zr = conv2d_g(hx, p["convzr1"], padding=(0, 2), activation="sigmoid")
    z, r = zr[:, :, :hdim], zr[:, :, hdim:]
    q = conv2d_g(jnp.concatenate([(r * net).astype(bf), x], axis=2),
                 p["convq1"], padding=(0, 2), activation="tanh")
    net = (1.0 - z) * net + z * q
    # --- vertical pass (5x1)
    hx = jnp.concatenate([net.astype(bf), x], axis=2)
    zr = conv2d_g(hx, p["convzr2"], padding=(2, 0), activation="sigmoid")
    z, r = zr[:, :, :hdim], zr[:, :, hdim:]
    q = conv2d_g(jnp.concatenate([(r * net).astype(bf), x], axis=2),
                 p["convq2"], padding=(2, 0), activation="tanh")
    net = (1.0 - z) * net + z * q

    # --- FlowHead conv1 + mask conv1 fused (same input, same relu)
    fm = conv2d_g(net, p["fh_mask1"], padding=1, activation="relu", out_dtype=bf)
    fh, mh = fm[:, :, :256], fm[:, :, 256:]
    delta_flow = conv2d_g(fh, p["fh_conv2"], padding=1)
    # 0.25 mask scale fused into the matmul epilogue (applied after bias).
    up_mask = conv2d_g(mh, p["mask2"], padding=0, scale=0.25)
    return net, up_mask, delta_flow


# ----------------------------------------------------------------------------
# MultiRAFT forward
# ----------------------------------------------------------------------------
def make_multiraft_params(seed=0, duplications=("update_block",)):
    kg = KeyGen(seed)
    params = {"duplications": duplications, "hdim": 128, "cdim": 128,
              "corr_levels": 4, "corr_radius": 4}
    if "fnet" in duplications:
        params["fnets"] = [make_basic_encoder(kg, 256) for _ in range(4)]
    else:
        params["fnet"] = make_basic_encoder(kg, 256)
    if "cnet" in duplications:
        params["cnets"] = [make_basic_encoder(kg, 256) for _ in range(4)]
    else:
        params["cnet"] = make_basic_encoder(kg, 256)
    groups = 4 if "update_block" in duplications else 1
    params["update_block"] = make_update_block_params(
        kg, groups, hdim=128,
        corr_levels=params["corr_levels"], corr_radius=params["corr_radius"])
    return params


def multiraft_forward(params, image1, image2, iters=12, flow_init=None,
                      test_mode=False):
    hdim, cdim = params["hdim"], params["cdim"]
    dup = params["duplications"]
    radius = params["corr_radius"]
    levels = params["corr_levels"]
    L = 4
    image1 = 2.0 * (image1 / 255.0) - 1.0
    image2 = 2.0 * (image2 / 255.0) - 1.0
    N, _, H, W = image1.shape

    # --- feature encoders -> correlation pyramid(s)
    if "fnet" in dup:
        pyr_list = []
        for fp in params["fnets"]:
            f1, f2 = basic_encoder(fp, [image1, image2], "instance")
            pyr_list.append(build_corr_pyramid(f1, f2, levels))
        pyramid = [jnp.concatenate([p[l] for p in pyr_list], axis=0)
                   for l in range(levels)]
        shared = False
    else:
        f1, f2 = basic_encoder(params["fnet"], [image1, image2], "instance")
        pyramid = build_corr_pyramid(f1, f2, levels)
        shared = True

    # --- context encoders
    if "cnet" in dup:
        nets, inps = [], []
        for cp in params["cnets"]:
            out = basic_encoder(cp, image1, "batch")
            nets.append(jnp.tanh(out[:, :hdim]))
            inps.append(jax.nn.relu(out[:, hdim:hdim + cdim]))
        netL = jnp.stack(nets, axis=0)
        inpL = jnp.stack(inps, axis=0)
    else:
        out = basic_encoder(params["cnet"], image1, "batch")
        net0 = jnp.tanh(out[:, :hdim])
        inp0 = jax.nn.relu(out[:, hdim:hdim + cdim])
        netL = jnp.broadcast_to(net0[None], (L,) + net0.shape)
        inpL = jnp.broadcast_to(inp0[None], (L,) + inp0.shape)

    H8, W8 = H // 8, W // 8
    coords0 = coords_grid(N, H8, W8)
    coords1 = coords_grid(N, H8, W8)
    if flow_init is not None:
        coords1 = coords1 + flow_init
    coords0L = jnp.broadcast_to(coords0[None], (L, N, 2, H8, W8))
    coords1L = jnp.asarray(jnp.broadcast_to(coords1[None], (L, N, 2, H8, W8)))
    netL = jnp.asarray(netL)

    ubp = params["update_block"]

    def step(net, coords1c):
        corr = corr_lookup_multi(pyramid, coords1c, radius, shared)
        flow = coords1c - coords0L
        net2, up_mask, delta = basic_update_block_g(ubp, net, inpL, corr,
                                                    flow, hdim)
        coords1n = coords1c + delta
        flow_up = upsample_flow_multi(coords1n - coords0L, up_mask)
        return net2, coords1n, flow_up

    step_j = jax.jit(step)

    preds = []
    for _ in range(iters):
        netL, coords1L, fup = step_j(netL, coords1L)
        preds.append(fup)
    allp = jnp.stack(preds, axis=0)                  # (iters, L, N, 2, H, W)
    allp = allp.transpose(2, 1, 0, 3, 4, 5)          # (N, L, iters, 2, H, W)
    if test_mode:
        return allp[:, :, -1]
    return allp


# ----------------------------------------------------------------------------
if __name__ == "__main__":
    # Smallest spatial size compatible with the 4-level correlation pyramid
    # (H/8 = W/8 = 16 -> pyramid levels 16, 8, 4, 2).
    N, H, W = 1, 128, 128
    ITERS = 2

    params = make_multiraft_params(seed=0, duplications=("update_block",))

    key = jax.random.PRNGKey(0)
    k1, k2 = jax.random.split(key)
    image1 = jax.random.uniform(k1, (N, 3, H, W), jnp.float32, 0.0, 255.0)
    image2 = jax.random.uniform(k2, (N, 3, H, W), jnp.float32, 0.0, 255.0)

    out = multiraft_forward(params, image1, image2, iters=ITERS)
    out = jax.block_until_ready(out)

    assert out.shape == (N, 4, ITERS, 2, H, W), out.shape
    assert bool(jnp.all(jnp.isfinite(out)))
    print("KERNEL_OK")
</pallas_src>

<mosaic_0001>
module attributes {stable_mosaic.version = 11 : i64} {
  func.func @_bmm_kernel(%arg0: i32, %arg1: i32, %arg2: i32, %arg3: i32, %arg4: memref<1x512x256xbf16, #tpu.memory_space<vmem>>, %arg5: memref<1x256x128xbf16, #tpu.memory_space<vmem>>, %arg6: memref<1x1x128xf32, #tpu.memory_space<vmem>>, %arg7: memref<1x512x128xf32, #tpu.memory_space<vmem>>, %arg8: memref<512x128xf32, #tpu.memory_space<vmem>>) attributes {dimension_semantics = [#tpu.dimension_semantics<parallel>, #tpu.dimension_semantics<parallel>, #tpu.dimension_semantics<parallel>, #tpu.dimension_semantics<arbitrary>], iteration_bounds = array<i64: 1, 16, 1, 1>, scalar_prefetch = 0 : i64, scratch_operands = 1 : i64, tpu.core_type = #tpu.core_type<tc>, window_params = [{transform_indices = @transform_0, window_bounds = array<i64: 1, 512, 256>}, {transform_indices = @transform_1, window_bounds = array<i64: 1, 256, 128>}, {transform_indices = @transform_2, window_bounds = array<i64: 1, 1, 128>}, {transform_indices = @transform_3, window_bounds = array<i64: 1, 512, 128>}]} {
    %c0_i32 = arith.constant 0 : i32
    %0 = arith.cmpi eq, %arg3, %c0_i32 : i32
    %1 = arith.extui %0 : i1 to i32
    %c0_i32_0 = arith.constant 0 : i32
    %2 = arith.cmpi ne, %1, %c0_i32_0 : i32
    scf.if %2 {
      %cst_12 = arith.constant 0.000000e+00 : f32
      %14 = vector.broadcast %cst_12 : f32 to vector<512x128xf32>
      %c0_13 = arith.constant 0 : index
      %c0_14 = arith.constant 0 : index
      %15 = vector.load %arg8[%c0_13, %c0_14] : memref<512x128xf32, #tpu.memory_space<vmem>>, vector<512x128xf32>
      tpu.vector_store %arg8[%c0_13, %c0_14], %14 {strides = array<i32>} : memref<512x128xf32, #tpu.memory_space<vmem>>, vector<512x128xf32>,
    } else {
    }
    %c0 = arith.constant 0 : index
    %c0_1 = arith.constant 0 : index
    %3 = vector.load %arg8[%c0, %c0_1] : memref<512x128xf32, #tpu.memory_space<vmem>>, vector<512x128xf32>
    %c0_2 = arith.constant 0 : index
    %c0_3 = arith.constant 0 : index
    %c0_4 = arith.constant 0 : index
    %4 = vector.load %arg4[%c0_2, %c0_3, %c0_4] : memref<1x512x256xbf16, #tpu.memory_space<vmem>>, vector<1x512x256xbf16>
    %5 = vector.shape_cast %4 : vector<1x512x256xbf16> to vector<512x256xbf16>
    %c0_5 = arith.constant 0 : index
    %c0_6 = arith.constant 0 : index
    %c0_7 = arith.constant 0 : index
    %6 = vector.load %arg5[%c0_5, %c0_6, %c0_7] : memref<1x256x128xbf16, #tpu.memory_space<vmem>>, vector<1x256x128xbf16>
    %7 = vector.shape_cast %6 : vector<1x256x128xbf16> to vector<256x128xbf16>
    %cst = arith.constant dense<0.000000e+00> : vector<512x128xf32>
    %8 = tpu.matmul %5, %7, %cst {dimension_numbers = #tpu.dot_dimension_numbers<[1], [0], [0], [1], [0, 0, 1, 1], [], []>} : vector<512x256xbf16>, vector<256x128xbf16>, vector<512x128xf32> -> vector<512x128xf32>
    %9 = arith.addf %3, %8 : vector<512x128xf32>
    %c0_8 = arith.constant 0 : index
    %c0_9 = arith.constant 0 : index
    %10 = vector.load %arg8[%c0_8, %c0_9] : memref<512x128xf32, #tpu.memory_space<vmem>>, vector<512x128xf32>
    tpu.vector_store %arg8[%c0_8, %c0_9], %9 {strides = array<i32>} : memref<512x128xf32, #tpu.memory_space<vmem>>, vector<512x128xf32>,
    %c0_i32_10 = arith.constant 0 : i32
    %11 = arith.cmpi eq, %arg3, %c0_i32_10 : i32
    %12 = arith.extui %11 : i1 to i32
    %c0_i32_11 = arith.constant 0 : i32
    %13 = arith.cmpi ne, %12, %c0_i32_11 : i32
    scf.if %13 {
      %c0_12 = arith.constant 0 : index
      %c0_13 = arith.constant 0 : index
      %14 = vector.load %arg8[%c0_12, %c0_13] : memref<512x128xf32, #tpu.memory_space<vmem>>, vector<512x128xf32>
      %c0_14 = arith.constant 0 : index
      %c0_15 = arith.constant 0 : index
      %c0_16 = arith.constant 0 : index
      %15 = vector.load %arg6[%c0_14, %c0_15, %c0_16] : memref<1x1x128xf32, #tpu.memory_space<vmem>>, vector<1x1x128xf32>
      %16 = vector.shape_cast %15 : vector<1x1x128xf32> to vector<1x128xf32>
      %17 = vector.broadcast %16 : vector<1x128xf32> to vector<512x128xf32>
      %18 = arith.addf %14, %17 : vector<512x128xf32>
      %c0_17 = arith.constant 0 : index
      %c0_18 = arith.constant 0 : index
      %c0_19 = arith.constant 0 : index
      %19 = vector.load %arg7[%c0_17, %c0_18, %c0_19] : memref<1x512x128xf32, #tpu.memory_space<vmem>>, vector<1x512x128xf32>
      %20 = vector.shape_cast %19 : vector<1x512x128xf32> to vector<512x128xf32>
      %21 = vector.shape_cast %18 : vector<512x128xf32> to vector<1x512x128xf32>
      tpu.vector_store %arg7[%c0_17, %c0_18, %c0_19], %21 {strides = array<i32>} : memref<1x512x128xf32, #tpu.memory_space<vmem>>, vector<1x512x128xf32>,
    } else {
    }
    return
  }
  func.func @transform_0(%arg0: i32, %arg1: i32, %arg2: i32, %arg3: i32) -> (i32, i32, i32) {
    %c0_i32 = arith.constant 0 : i32
    return %arg0, %arg1, %arg3 : i32, i32, i32
  }
  func.func @transform_1(%arg0: i32, %arg1: i32, %arg2: i32, %arg3: i32) -> (i32, i32, i32) {
    %c0_i32 = arith.constant 0 : i32
    %c0_i32_0 = arith.constant 0 : i32
    return %c0_i32, %arg3, %arg2 : i32, i32, i32
  }
  func.func @transform_2(%arg0: i32, %arg1: i32, %arg2: i32, %arg3: i32) -> (i32, i32, i32) {
    %c0_i32 = arith.constant 0 : i32
    %c0_i32_0 = arith.constant 0 : i32
    %c0_i32_1 = arith.constant 0 : i32
    return %c0_i32, %c0_i32_0, %arg2 : i32, i32, i32
  }
  func.func @transform_3(%arg0: i32, %arg1: i32, %arg2: i32, %arg3: i32) -> (i32, i32, i32) {
    %c0_i32 = arith.constant 0 : i32
    return %arg0, %arg1, %arg2 : i32, i32, i32
  }
}

</mosaic_0001>

<bundles_post_ra>
// kernel: grouped_matmul.1
= control target key start
LH: loop header
LB: loop body
LE: loop exit
PB: predicated region body
PF: predicated region fallthrough
CT: control target
= control target key end

     0   :  { %s2011_s12 = smov 0   ;;  %s2013_s13 = smov 0   ;;  %s2332_s0 = inlined_call_operand.vmem [shape: bf16[1,8192,256], index: 0, kind: input, shape index: {}]   ;;  %s2333_s1 = inlined_call_operand.vmem [shape: bf16[1,256,128], index: 1, kind: input, shape index: {}]   ;;  %s2334_s2 = inlined_call_operand.vmem [shape: f32[1,1,128], index: 2, kind: input, shape index: {}]   ;;  %s2335_s3 = inlined_call_operand.vmem [shape: f32[1,8192,128], index: 3, kind: output, shape index: {}]  }
   0x1   :  { %s2015_s14 = smov 0  }
   0x2 LB: > { %s35_s15 = sadd.s32 1, %s1984_s13  ;;  %p1707_p0 = scmp.ge.s32.totalorder %s1988_s14, 1  ;;  %s1988_s14 = sphi %s2015_s14, %s13_s14   ;;  %s1984_s13 = sphi %s2013_s13, %s2337_s13   ;;  %s1980_s12 = sphi %s2011_s12, %s2336_s12  }
   0x3   : > { %p37_p1 = scmp.ge.s32.totalorder %s35_s15, 16  ;;  %p206_p2 = scmp.lt.s32.totalorder %s1988_s14, 17 }
   0x5   : > { %s2339_s15 = smov (%p37_p1, %s35_s15), 0  ;;  %p207_p3 = pnand %p1707_p0, %p206_p2 }
   0x6   : > { %v1854_v0 = vld [vmem:[%s2333_s1] sm:$0xff] (!%p207_p3)   ;;  %v1990_v1 = vmov (!%p207_p3), 0   ;;  %s1708_s18 = sshll.u32 (!%p207_p3), %s1980_s12, 6  ;;  %v1855_v2 = vld [vmem:[%s2333_s1 + $0x8] sm:$0xff] (!%p207_p3)   ;;  %v1856_v3 = vld [vmem:[%s2333_s1 + $0x10] sm:$0xff] (!%p207_p3)  }
   0x7   : > { %210 = sbr.rel (%p207_p3) target bundleno = 408 (0x198), region = 32  ;;  %943 = vmatprep.subr.bf16.mxu0 (!%p207_p3), %v1990_v1  ;;  %1797 = vmatprep.subr.bf16.mxu1 (!%p207_p3), %v1990_v1  ;;  %p261_p4 = scmp.lt.s32.totalorder (!%p207_p3), %s1708_s18, 1023  ;;  %v1857_v4 = vld [vmem:[%s2333_s1 + $0x18] sm:$0xff] (!%p207_p3)   ;;  %v1858_v5 = vld [vmem:[%s2333_s1 + $0x20] sm:$0xff] (!%p207_p3)   ;;  %v1859_v7 = vld [vmem:[%s2333_s1 + $0x28] sm:$0xff] (!%p207_p3)  }
   0x8   : > { %944 = vmatpush1.bf16.msra.mxu0 (!%p207_p3), %v1854_v0  ;;  %1813 = vmatpush1.bf16.msra.mxu1 (!%p207_p3), %v1854_v0  ;;  %v1860_v9 = vld [vmem:[%s2333_s1 + $0x30] sm:$0xff] (!%p207_p3)   ;;  %v1861_v10 = vld [vmem:[%s2333_s1 + $0x38] sm:$0xff] (!%p207_p3)   ;;  %v1862_v11 = vld [vmem:[%s2333_s1 + $0x40] sm:$0xff] (!%p207_p3)  }
   0x9   : > { %945 = vmatprep.subr.bf16.mxu0 (!%p207_p3), %v1990_v1  ;;  %1798 = vmatprep.subr.bf16.mxu1 (!%p207_p3), %v1990_v1  ;;  %v1863_v12 = vld [vmem:[%s2333_s1 + $0x48] sm:$0xff] (!%p207_p3)   ;;  %v1864_v13 = vld [vmem:[%s2333_s1 + $0x50] sm:$0xff] (!%p207_p3)   ;;  %v1865_v14 = vld [vmem:[%s2333_s1 + $0x58] sm:$0xff] (!%p207_p3)  }
   0xa   : > { %v1866_v15 = vld [vmem:[%s2333_s1 + $0x60] sm:$0xff] (!%p207_p3)   ;;  %v1867_v16 = vld [vmem:[%s2333_s1 + $0x68] sm:$0xff] (!%p207_p3)   ;;  %v1868_v17 = vld [vmem:[%s2333_s1 + $0x70] sm:$0xff] (!%p207_p3)  }
   0xb   : > { %v1869_v18 = vld [vmem:[%s2333_s1 + $0x78] sm:$0xff] (!%p207_p3)  }
   0xc   : > { %946 = vmatpush1.bf16.msra.mxu0 (!%p207_p3), %v1855_v2  ;;  %1814 = vmatpush1.bf16.msra.mxu1 (!%p207_p3), %v1855_v2 }
   0xd   : > { %947 = vmatprep.subr.bf16.mxu0 (!%p207_p3), %v1990_v1  ;;  %1799 = vmatprep.subr.bf16.mxu1 (!%p207_p3), %v1990_v1 }
   0xe   : > { %s2341_s18 = smov (!%p261_p4, %s1708_s18), 1023 }
   0xf   : > { %s1796_s25 = sshll.u32 %s2341_s18, 3 }
  0x10   : > { %948 = vmatpush1.bf16.msra.mxu0 %v1856_v3  ;;  %1815 = vmatpush1.bf16.msra.mxu1 %v1856_v3  ;;  %s2060_s30 = scalar_lea.vmem %s2332_s0, %s1796_s25  ;;  %s2193_s9 = scalar_lea.vmem %s2335_s3, %s1796_s25 }
  0x11   : > { %949 = vmatprep.subr.bf16.mxu0 %v1990_v1  ;;  %1800 = vmatprep.subr.bf16.mxu1 %v1990_v1  ;;  %v1872_v6 = vld [vmem:[%s2060_s30 + $0x4] ss:$8 sps:$4 sm:$0xff]   ;;  %v1870_v19 = vld [vmem:[%s2060_s30] ss:$8 sps:$4 sm:$0xff]   ;;  %v1876_v21 = vld [vmem:[%s2060_s30 + $0x14] ss:$8 sps:$4 sm:$0xff]  }
  0x12   : > { %v1875_v8 = vld [vmem:[%s2060_s30 + $0x104] ss:$8 sps:$4 sm:$0xff]   ;;  %975 = vmatprep.mubr.bf16.mxu0 %v1872_v6  ;;  %v1873_v20 = vld [vmem:[%s2060_s30 + $0x100] ss:$8 sps:$4 sm:$0xff]   ;;  %v1878_v22 = vld [vmem:[%s2060_s30 + $0x114] ss:$8 sps:$4 sm:$0xff]  }
  0x13   : > { %1103 = vmatprep.mubr.bf16.mxu1 %v1875_v8  ;;  %v1880_v23 = vld [vmem:[%s2060_s30 + $0x10] ss:$8 sps:$4 sm:$0xff]   ;;  %v1882_v25 = vld [vmem:[%s2060_s30 + $0x24] ss:$8 sps:$4 sm:$0xff]   ;;  %v1886_v27 = vld [vmem:[%s2060_s30 + $0x20] ss:$8 sps:$4 sm:$0xff]  }
  0x14   : > { %950 = vmatpush1.bf16.msra.mxu0 %v1857_v4  ;;  %1816 = vmatpush1.bf16.msra.mxu1 %v1857_v4  ;;  %v1881_v24 = vld [vmem:[%s2060_s30 + $0x110] ss:$8 sps:$4 sm:$0xff]   ;;  %v1884_v26 = vld [vmem:[%s2060_s30 + $0x124] ss:$8 sps:$4 sm:$0xff]   ;;  %v1887_v28 = vld [vmem:[%s2060_s30 + $0x120] ss:$8 sps:$4 sm:$0xff]  }
  0x15   : > { %951 = vmatprep.subr.bf16.mxu0 %v1990_v1  ;;  %1801 = vmatprep.subr.bf16.mxu1 %v1990_v1  ;;  %v1888_v29 = vld [vmem:[%s2060_s30 + $0x34] ss:$8 sps:$4 sm:$0xff]   ;;  %v1892_v31 = vld [vmem:[%s2060_s30 + $0x30] ss:$8 sps:$4 sm:$0xff]   ;;  %v1894_v33 = vld [vmem:[%s2060_s30 + $0x44] ss:$8 sps:$4 sm:$0xff]  }
  0x16   : > { %v1890_v30 = vld [vmem:[%s2060_s30 + $0x134] ss:$8 sps:$4 sm:$0xff]   ;;  %v1893_v32 = vld [vmem:[%s2060_s30 + $0x130] ss:$8 sps:$4 sm:$0xff]   ;;  %v1896_v34 = vld [vmem:[%s2060_s30 + $0x144] ss:$8 sps:$4 sm:$0xff]  }
  0x17   : > { %v1898_v35 = vld [vmem:[%s2060_s30 + $0x40] ss:$8 sps:$4 sm:$0xff]   ;;  %v1900_v37 = vld [vmem:[%s2060_s30 + $0x54] ss:$8 sps:$4 sm:$0xff]   ;;  %v1904_v39 = vld [vmem:[%s2060_s30 + $0x50] ss:$8 sps:$4 sm:$0xff]  }
  0x18   : > { %952 = vmatpush1.bf16.msra.mxu0 %v1858_v5  ;;  %1817 = vmatpush1.bf16.msra.mxu1 %v1858_v5  ;;  %v1899_v36 = vld [vmem:[%s2060_s30 + $0x140] ss:$8 sps:$4 sm:$0xff]   ;;  %v1902_v38 = vld [vmem:[%s2060_s30 + $0x154] ss:$8 sps:$4 sm:$0xff]   ;;  %v1905_v40 = vld [vmem:[%s2060_s30 + $0x150] ss:$8 sps:$4 sm:$0xff]  }
  0x19   : > { %953 = vmatprep.subr.bf16.mxu0 %v1990_v1  ;;  %1802 = vmatprep.subr.bf16.mxu1 %v1990_v1  ;;  %v1906_v41 = vld [vmem:[%s2060_s30 + $0x64] ss:$8 sps:$4 sm:$0xff]   ;;  %v1910_v43 = vld [vmem:[%s2060_s30 + $0x60] ss:$8 sps:$4 sm:$0xff]   ;;  %v1912_v45 = vld [vmem:[%s2060_s30 + $0x74] ss:$8 sps:$4 sm:$0xff]  }
  0x1a   : > { %v1908_v42 = vld [vmem:[%s2060_s30 + $0x164] ss:$8 sps:$4 sm:$0xff]   ;;  %v1911_v44 = vld [vmem:[%s2060_s30 + $0x160] ss:$8 sps:$4 sm:$0xff]   ;;  %v1914_v46 = vld [vmem:[%s2060_s30 + $0x174] ss:$8 sps:$4 sm:$0xff]  }
  0x1b   : > { %v1916_v47 = vld [vmem:[%s2060_s30 + $0x70] ss:$8 sps:$4 sm:$0xff]   ;;  %v1918_v49 = vld [vmem:[%s2060_s30 + $0x84] ss:$8 sps:$4 sm:$0xff]   ;;  %v1922_v51 = vld [vmem:[%s2060_s30 + $0x80] ss:$8 sps:$4 sm:$0xff]  }
  0x1c   : > { %954 = vmatpush1.bf16.msra.mxu0 %v1859_v7  ;;  %1818 = vmatpush1.bf16.msra.mxu1 %v1859_v7  ;;  %v1917_v48 = vld [vmem:[%s2060_s30 + $0x170] ss:$8 sps:$4 sm:$0xff]   ;;  %v1920_v50 = vld [vmem:[%s2060_s30 + $0x184] ss:$8 sps:$4 sm:$0xff]   ;;  %v1923_v52 = vld [vmem:[%s2060_s30 + $0x180] ss:$8 sps:$4 sm:$0xff]  }
  0x1d   : > { %955 = vmatprep.subr.bf16.mxu0 %v1990_v1  ;;  %1803 = vmatprep.subr.bf16.mxu1 %v1990_v1  ;;  %v1924_v53 = vld [vmem:[%s2060_s30 + $0x94] ss:$8 sps:$4 sm:$0xff]   ;;  %v1928_v55 = vld [vmem:[%s2060_s30 + $0x90] ss:$8 sps:$4 sm:$0xff]   ;;  %v1930_v57 = vld [vmem:[%s2060_s30 + $0xa4] ss:$8 sps:$4 sm:$0xff]  }
  0x1e   : > { %v1926_v54 = vld [vmem:[%s2060_s30 + $0x194] ss:$8 sps:$4 sm:$0xff]   ;;  %v1929_v56 = vld [vmem:[%s2060_s30 + $0x190] ss:$8 sps:$4 sm:$0xff]   ;;  %v1932_v58 = vld [vmem:[%s2060_s30 + $0x1a4] ss:$8 sps:$4 sm:$0xff]  }
  0x1f   : > { %v1934_v59 = vld [vmem:[%s2060_s30 + $0xa0] ss:$8 sps:$4 sm:$0xff]   ;;  %v1936_v61 = vld [vmem:[%s2060_s30 + $0xb4] ss:$8 sps:$4 sm:$0xff]   ;;  %v1940_v63 = vld [vmem:[%s2060_s30 + $0xb0] ss:$8 sps:$4 sm:$0xff]  }
  0x20   : > { %956 = vmatpush1.bf16.msra.mxu0 %v1860_v9  ;;  %1819 = vmatpush1.bf16.msra.mxu1 %v1860_v9  ;;  %v1935_v60 = vld [vmem:[%s2060_s30 + $0x1a0] ss:$8 sps:$4 sm:$0xff]   ;;  %v1938_v62 = vld [vmem:[%s2060_s30 + $0x1b4] ss:$8 sps:$4 sm:$0xff]   ;;  %v1941_v0 = vld [vmem:[%s2060_s30 + $0x1b0] ss:$8 sps:$4 sm:$0xff]  }
  0x21   : > { %957 = vmatprep.subr.bf16.mxu0 %v1990_v1  ;;  %1804 = vmatprep.subr.bf16.mxu1 %v1990_v1  ;;  %v1944_v2 = vld [vmem:[%s2060_s30 + $0x1c4] ss:$8 sps:$4 sm:$0xff]   ;;  %v1946_v3 = vld [vmem:[%s2060_s30 + $0xc0] ss:$8 sps:$4 sm:$0xff]   ;;  %v1948_v5 = vld [vmem:[%s2060_s30 + $0xd4] ss:$8 sps:$4 sm:$0xff]  }
  0x22   : > { %v1947_v4 = vld [vmem:[%s2060_s30 + $0x1c0] ss:$8 sps:$4 sm:$0xff]   ;;  %v1950_v6 = vld [vmem:[%s2060_s30 + $0x1d4] ss:$8 sps:$4 sm:$0xff]   ;;  %v1952_v7 = vld [vmem:[%s2060_s30 + $0xd0] ss:$8 sps:$4 sm:$0xff]  }
  0x23   : > { %v1953_v8 = vld [vmem:[%s2060_s30 + $0x1d0] ss:$8 sps:$4 sm:$0xff]   ;;  %v1954_v9 = vld [vmem:[%s2060_s30 + $0xe4] ss:$8 sps:$4 sm:$0xff]  }
  0x24   : > { %958 = vmatpush1.bf16.msra.mxu0 %v1861_v10  ;;  %1820 = vmatpush1.bf16.msra.mxu1 %v1861_v10  ;;  %v1956_v10 = vld [vmem:[%s2060_s30 + $0x1e4] ss:$8 sps:$4 sm:$0xff]  }
  0x25   : > { %959 = vmatprep.subr.bf16.mxu0 %v1990_v1  ;;  %1805 = vmatprep.subr.bf16.mxu1 %v1990_v1 }
  0x28   : > { %960 = vmatpush1.bf16.msra.mxu0 %v1862_v11  ;;  %1821 = vmatpush1.bf16.msra.mxu1 %v1862_v11  ;;  %v1958_v11 = vld [vmem:[%s2060_s30 + $0xe0] ss:$8 sps:$4 sm:$0xff]  }
  0x29   : > { %961 = vmatprep.subr.bf16.mxu0 %v1990_v1  ;;  %1806 = vmatprep.subr.bf16.mxu1 %v1990_v1 }
  0x2c   : > { %962 = vmatpush1.bf16.msra.mxu0 %v1863_v12  ;;  %1822 = vmatpush1.bf16.msra.mxu1 %v1863_v12  ;;  %v1959_v12 = vld [vmem:[%s2060_s30 + $0x1e0] ss:$8 sps:$4 sm:$0xff]  }
  0x2d   : > { %963 = vmatprep.subr.bf16.mxu0 %v1990_v1  ;;  %1807 = vmatprep.subr.bf16.mxu1 %v1990_v1 }
  0x30   : > { %964 = vmatpush1.bf16.msra.mxu0 %v1864_v13  ;;  %1823 = vmatpush1.bf16.msra.mxu1 %v1864_v13  ;;  %v1960_v13 = vld [vmem:[%s2060_s30 + $0xf4] ss:$8 sps:$4 sm:$0xff]  }
  0x31   : > { %965 = vmatprep.subr.bf16.mxu0 %v1990_v1  ;;  %1808 = vmatprep.subr.bf16.mxu1 %v1990_v1 }
  0x34   : > { %966 = vmatpush1.bf16.msra.mxu0 %v1865_v14  ;;  %1824 = vmatpush1.bf16.msra.mxu1 %v1865_v14  ;;  %v1962_v14 = vld [vmem:[%s2060_s30 + $0x1f4] ss:$8 sps:$4 sm:$0xff]  }
  0x35   : > { %967 = vmatprep.subr.bf16.mxu0 %v1990_v1  ;;  %1809 = vmatprep.subr.bf16.mxu1 %v1990_v1 }
  0x38   : > { %968 = vmatpush1.bf16.msra.mxu0 %v1866_v15  ;;  %1825 = vmatpush1.bf16.msra.mxu1 %v1866_v15  ;;  %v1964_v15 = vld [vmem:[%s2060_s30 + $0xf0] ss:$8 sps:$4 sm:$0xff]  }
  0x39   : > { %969 = vmatprep.subr.bf16.mxu0 %v1990_v1  ;;  %1810 = vmatprep.subr.bf16.mxu1 %v1990_v1 }
  0x3c   : > { %970 = vmatpush1.bf16.msra.mxu0 %v1867_v16  ;;  %1826 = vmatpush1.bf16.msra.mxu1 %v1867_v16  ;;  %v1965_v16 = vld [vmem:[%s2060_s30 + $0x1f0] ss:$8 sps:$4 sm:$0xff]  }
  0x3d   : > { %971 = vmatprep.subr.bf16.mxu0 %v1990_v1  ;;  %1811 = vmatprep.subr.bf16.mxu1 %v1990_v1 }
  0x40   : > { %972 = vmatpush1.bf16.msra.mxu0 %v1868_v17  ;;  %1827 = vmatpush1.bf16.msra.mxu1 %v1868_v17  ;;  %v2186_v17 = vld [vmem:[%s2334_s2] ss:$0 sm:$0xff] }
  0x41   : > { %973 = vmatprep.subr.bf16.mxu0 %v1990_v1  ;;  %1812 = vmatprep.subr.bf16.mxu1 %v1990_v1  ;;  %v1942_v1 = vld [vmem:[%s2060_s30 + $0xc4] ss:$8 sps:$4 sm:$0xff]  }
  0x44   : > { %974 = vmatpush1.bf16.msra.mxu0 %v1869_v18  ;;  %1828 = vmatpush1.bf16.msra.mxu1 %v1869_v18 }
  0x47   : > { %976 = vmatmul.mubr.bf16.vlgmr.msra.gmra.mrb[0].mxu0 %v1870_v19  ;;  %1104 = vmatmul.mubr.bf16.vlgmr.msra.gmra.mrb[0].mxu1 %v1873_v20 }
  0x48   : > { %983 = vmatprep.mubr.bf16.mxu0 %v1876_v21  ;;  %1111 = vmatprep.mubr.bf16.mxu1 %v1878_v22 }
  0x4f   : > { %984 = vmatmul.mubr.bf16.gmra.mrb[4].mxu0 %v1880_v23  ;;  %1112 = vmatmul.mubr.bf16.gmra.mrb[4].mxu1 %v1881_v24 }
  0x50   : > { %991 = vmatprep.mubr.bf16.mxu0 %v1882_v25  ;;  %1119 = vmatprep.mubr.bf16.mxu1 %v1884_v26 }
  0x57   : > { %992 = vmatmul.mubr.bf16.gmra.mrb[8].mxu0 %v1886_v27  ;;  %1120 = vmatmul.mubr.bf16.gmra.mrb[8].mxu1 %v1887_v28 }
  0x58   : > { %999 = vmatprep.mubr.bf16.mxu0 %v1888_v29  ;;  %1127 = vmatprep.mubr.bf16.mxu1 %v1890_v30 }
  0x5f   : > { %1000 = vmatmul.mubr.bf16.gmra.mrb[12].mxu0 %v1892_v31  ;;  %1128 = vmatmul.mubr.bf16.gmra.mrb[12].mxu1 %v1893_v32 }
  0x60   : > { %1007 = vmatprep.mubr.bf16.mxu0 %v1894_v33  ;;  %1135 = vmatprep.mubr.bf16.mxu1 %v1896_v34 }
  0x67   : > { %1008 = vmatmul.mubr.bf16.gmra.mrb[16].mxu0 %v1898_v35  ;;  %1136 = vmatmul.mubr.bf16.gmra.mrb[16].mxu1 %v1899_v36 }
  0x68   : > { %1015 = vmatprep.mubr.bf16.mxu0 %v1900_v37  ;;  %1143 = vmatprep.mubr.bf16.mxu1 %v1902_v38 }
  0x6f   : > { %1016 = vmatmul.mubr.bf16.gmra.mrb[20].mxu0 %v1904_v39  ;;  %1144 = vmatmul.mubr.bf16.gmra.mrb[20].mxu1 %v1905_v40 }
  0x70   : > { %1023 = vmatprep.mubr.bf16.mxu0 %v1906_v41  ;;  %1151 = vmatprep.mubr.bf16.mxu1 %v1908_v42 }
  0x77   : > { %1024 = vmatmul.mubr.bf16.gmra.mrb[24].mxu0 %v1910_v43  ;;  %1152 = vmatmul.mubr.bf16.gmra.mrb[24].mxu1 %v1911_v44 }
  0x78   : > { %1031 = vmatprep.mubr.bf16.mxu0 %v1912_v45  ;;  %1159 = vmatprep.mubr.bf16.mxu1 %v1914_v46 }
  0x7f   : > { %1032 = vmatmul.mubr.bf16.gmra.mrb[28].mxu0 %v1916_v47  ;;  %1160 = vmatmul.mubr.bf16.gmra.mrb[28].mxu1 %v1917_v48 }
  0x80   : > { %1039 = vmatprep.mubr.bf16.mxu0 %v1918_v49  ;;  %1167 = vmatprep.mubr.bf16.mxu1 %v1920_v50 }
  0x87   : > { %1040 = vmatmul.mubr.bf16.gmra.mrb[32].mxu0 %v1922_v51  ;;  %1168 = vmatmul.mubr.bf16.gmra.mrb[32].mxu1 %v1923_v52 }
  0x88   : > { %1047 = vmatprep.mubr.bf16.mxu0 %v1924_v53  ;;  %1175 = vmatprep.mubr.bf16.mxu1 %v1926_v54 }
  0x8f   : > { %1048 = vmatmul.mubr.bf16.gmra.mrb[36].mxu0 %v1928_v55  ;;  %1176 = vmatmul.mubr.bf16.gmra.mrb[36].mxu1 %v1929_v56 }
  0x90   : > { %1055 = vmatprep.mubr.bf16.mxu0 %v1930_v57  ;;  %1183 = vmatprep.mubr.bf16.mxu1 %v1932_v58 }
  0x97   : > { %1056 = vmatmul.mubr.bf16.gmra.mrb[40].mxu0 %v1934_v59  ;;  %1184 = vmatmul.mubr.bf16.gmra.mrb[40].mxu1 %v1935_v60 }
  0x98   : > { %1063 = vmatprep.mubr.bf16.mxu0 %v1936_v61  ;;  %1191 = vmatprep.mubr.bf16.mxu1 %v1938_v62 }
  0x9f   : > { %1064 = vmatmul.mubr.bf16.gmra.mrb[44].mxu0 %v1940_v63  ;;  %1192 = vmatmul.mubr.bf16.gmra.mrb[44].mxu1 %v1941_v0 }
  0xa0   : > { %1071 = vmatprep.mubr.bf16.mxu0 %v1942_v1  ;;  %1199 = vmatprep.mubr.bf16.mxu1 %v1944_v2 }
  0xa7   : > { %1072 = vmatmul.mubr.bf16.gmra.mrb[48].mxu0 %v1946_v3  ;;  %1200 = vmatmul.mubr.bf16.gmra.mrb[48].mxu1 %v1947_v4 }
  0xa8   : > { %1079 = vmatprep.mubr.bf16.mxu0 %v1948_v5  ;;  %1207 = vmatprep.mubr.bf16.mxu1 %v1950_v6 }
  0xaf   : > { %1080 = vmatmul.mubr.bf16.gmra.mrb[52].mxu0 %v1952_v7  ;;  %1208 = vmatmul.mubr.bf16.gmra.mrb[52].mxu1 %v1953_v8 }
  0xb0   : > { %1087 = vmatprep.mubr.bf16.mxu0 %v1954_v9  ;;  %1215 = vmatprep.mubr.bf16.mxu1 %v1956_v10 }
  0xb7   : > { %1088 = vmatmul.mubr.bf16.gmra.mrb[56].mxu0 %v1958_v11  ;;  %1216 = vmatmul.mubr.bf16.gmra.mrb[56].mxu1 %v1959_v12 }
  0xb8   : > { %1095 = vmatprep.mubr.bf16.mxu0 %v1960_v13  ;;  %1223 = vmatprep.mubr.bf16.mxu1 %v1962_v14 }
  0xbf   : > { %1096 = vmatmul.mubr.bf16.gmra.mrb[60].mxu0 %v1964_v15  ;;  %1224 = vmatmul.mubr.bf16.gmra.mrb[60].mxu1 %v1965_v16 }
 0x11a   : > { %v977_v18 = vpop.f32.mrb[0].mxu0  ;;  %v1105_v19 = vpop.f32.mrb[0].mxu1 }
 0x11b   : > { %v1434_v20 = vadd.f32 %v2186_v17, %v977_v18  ;;  %v1466_v21 = vadd.f32 %v2186_v17, %v1105_v19  ;;  %v979_v22 = vpop.f32.mrb[1].mxu0  ;;  %v1107_v23 = vpop.f32.mrb[1].mxu1 }
 0x11c   : > { %v980_v24 = vpop.f32.mrb[2].mxu0  ;;  %v1108_v25 = vpop.f32.mrb[2].mxu1 }
 0x11d   : > { %1498 = vst [vmem:[%s2193_s9] sm:$0xff] %v1434_v20  ;;  %1530 = vst [vmem:[%s2193_s9 + $0x100] sm:$0xff] %v1466_v21  ;;  %v1435_v26 = vadd.f32 %v2186_v17, %v980_v24  ;;  %v1467_v27 = vadd.f32 %v2186_v17, %v1108_v25  ;;  %v982_v28 = vpop.f32.mrb[3].mxu0  ;;  %v1110_v29 = vpop.f32.mrb[3].mxu1 }
 0x11f   : > { %1499 = vst [vmem:[%s2193_s9 + $0x8] sm:$0xff] %v1435_v26  ;;  %1531 = vst [vmem:[%s2193_s9 + $0x108] sm:$0xff] %v1467_v27 }
 0x122   : > { %v985_v30 = vpop.f32.mrb[4].mxu0  ;;  %v1113_v31 = vpop.f32.mrb[4].mxu1 }
 0x123   : > { %v1436_v32 = vadd.f32 %v2186_v17, %v985_v30  ;;  %v1468_v33 = vadd.f32 %v2186_v17, %v1113_v31  ;;  %v987_v34 = vpop.f32.mrb[5].mxu0  ;;  %v1115_v35 = vpop.f32.mrb[5].mxu1 }
 0x124   : > { %v988_v36 = vpop.f32.mrb[6].mxu0  ;;  %v1116_v37 = vpop.f32.mrb[6].mxu1 }
 0x125   : > { %1500 = vst [vmem:[%s2193_s9 + $0x10] sm:$0xff] %v1436_v32  ;;  %1532 = vst [vmem:[%s2193_s9 + $0x110] sm:$0xff] %v1468_v33  ;;  %v1437_v38 = vadd.f32 %v2186_v17, %v988_v36  ;;  %v1469_v39 = vadd.f32 %v2186_v17, %v1116_v37  ;;  %v990_v40 = vpop.f32.mrb[7].mxu0  ;;  %v1118_v41 = vpop.f32.mrb[7].mxu1 }
 0x127   : > { %1501 = vst [vmem:[%s2193_s9 + $0x18] sm:$0xff] %v1437_v38  ;;  %1533 = vst [vmem:[%s2193_s9 + $0x118] sm:$0xff] %v1469_v39 }
 0x12a   : > { %v993_v42 = vpop.f32.mrb[8].mxu0  ;;  %v1121_v43 = vpop.f32.mrb[8].mxu1 }
 0x12b   : > { %v1438_v44 = vadd.f32 %v2186_v17, %v993_v42  ;;  %v1470_v45 = vadd.f32 %v2186_v17, %v1121_v43  ;;  %v995_v46 = vpop.f32.mrb[9].mxu0  ;;  %v1123_v47 = vpop.f32.mrb[9].mxu1 }
 0x12c   : > { %v996_v48 = vpop.f32.mrb[10].mxu0  ;;  %v1124_v49 = vpop.f32.mrb[10].mxu1 }
 0x12d   : > { %1502 = vst [vmem:[%s2193_s9 + $0x20] sm:$0xff] %v1438_v44  ;;  %1534 = vst [vmem:[%s2193_s9 + $0x120] sm:$0xff] %v1470_v45  ;;  %v1439_v50 = vadd.f32 %v2186_v17, %v996_v48  ;;  %v1471_v51 = vadd.f32 %v2186_v17, %v1124_v49  ;;  %v998_v52 = vpop.f32.mrb[11].mxu0  ;;  %v1126_v53 = vpop.f32.mrb[11].mxu1 }
 0x12f   : > { %1503 = vst [vmem:[%s2193_s9 + $0x28] sm:$0xff] %v1439_v50  ;;  %1535 = vst [vmem:[%s2193_s9 + $0x128] sm:$0xff] %v1471_v51 }
 0x132   : > { %v1001_v54 = vpop.f32.mrb[12].mxu0  ;;  %v1129_v55 = vpop.f32.mrb[12].mxu1 }
 0x133   : > { %v1440_v56 = vadd.f32 %v2186_v17, %v1001_v54  ;;  %v1472_v57 = vadd.f32 %v2186_v17, %v1129_v55  ;;  %v1003_v58 = vpop.f32.mrb[13].mxu0  ;;  %v1131_v59 = vpop.f32.mrb[13].mxu1 }
 0x134   : > { %v1004_v60 = vpop.f32.mrb[14].mxu0  ;;  %v1132_v61 = vpop.f32.mrb[14].mxu1 }
 0x135   : > { %1504 = vst [vmem:[%s2193_s9 + $0x30] sm:$0xff] %v1440_v56  ;;  %1536 = vst [vmem:[%s2193_s9 + $0x130] sm:$0xff] %v1472_v57  ;;  %v1441_v62 = vadd.f32 %v2186_v17, %v1004_v60  ;;  %v1473_v63 = vadd.f32 %v2186_v17, %v1132_v61  ;;  %v1006_v0 = vpop.f32.mrb[15].mxu0  ;;  %v1134_v1 = vpop.f32.mrb[15].mxu1 }
 0x137   : > { %1505 = vst [vmem:[%s2193_s9 + $0x38] sm:$0xff] %v1441_v62  ;;  %1537 = vst [vmem:[%s2193_s9 + $0x138] sm:$0xff] %v1473_v63 }
 0x13a   : > { %v1009_v2 = vpop.f32.mrb[16].mxu0  ;;  %v1137_v3 = vpop.f32.mrb[16].mxu1 }
 0x13b   : > { %v1442_v4 = vadd.f32 %v2186_v17, %v1009_v2  ;;  %v1474_v5 = vadd.f32 %v2186_v17, %v1137_v3  ;;  %v1011_v6 = vpop.f32.mrb[17].mxu0  ;;  %v1139_v7 = vpop.f32.mrb[17].mxu1 }
 0x13c   : > { %v1012_v8 = vpop.f32.mrb[18].mxu0  ;;  %v1140_v9 = vpop.f32.mrb[18].mxu1 }
 0x13d   : > { %1506 = vst [vmem:[%s2193_s9 + $0x40] sm:$0xff] %v1442_v4  ;;  %1538 = vst [vmem:[%s2193_s9 + $0x140] sm:$0xff] %v1474_v5  ;;  %v1443_v10 = vadd.f32 %v2186_v17, %v1012_v8  ;;  %v1475_v11 = vadd.f32 %v2186_v17, %v1140_v9  ;;  %v1014_v12 = vpop.f32.mrb[19].mxu0  ;;  %v1142_v13 = vpop.f32.mrb[19].mxu1 }
 0x13f   : > { %1507 = vst [vmem:[%s2193_s9 + $0x48] sm:$0xff] %v1443_v10  ;;  %1539 = vst [vmem:[%s2193_s9 + $0x148] sm:$0xff] %v1475_v11 }
 0x142   : > { %v1017_v14 = vpop.f32.mrb[20].mxu0  ;;  %v1145_v15 = vpop.f32.mrb[20].mxu1 }
 0x143   : > { %v1444_v16 = vadd.f32 %v2186_v17, %v1017_v14  ;;  %v1476_v18 = vadd.f32 %v2186_v17, %v1145_v15  ;;  %v1019_v19 = vpop.f32.mrb[21].mxu0  ;;  %v1147_v20 = vpop.f32.mrb[21].mxu1 }
 0x144   : > { %v1020_v21 = vpop.f32.mrb[22].mxu0  ;;  %v1148_v22 = vpop.f32.mrb[22].mxu1 }
 0x145   : > { %1508 = vst [vmem:[%s2193_s9 + $0x50] sm:$0xff] %v1444_v16  ;;  %1540 = vst [vmem:[%s2193_s9 + $0x150] sm:$0xff] %v1476_v18  ;;  %v1445_v23 = vadd.f32 %v2186_v17, %v1020_v21  ;;  %v1477_v24 = vadd.f32 %v2186_v17, %v1148_v22  ;;  %v1022_v25 = vpop.f32.mrb[23].mxu0  ;;  %v1150_v26 = vpop.f32.mrb[23].mxu1 }
 0x147   : > { %1509 = vst [vmem:[%s2193_s9 + $0x58] sm:$0xff] %v1445_v23  ;;  %1541 = vst [vmem:[%s2193_s9 + $0x158] sm:$0xff] %v1477_v24 }
 0x14a   : > { %v1025_v27 = vpop.f32.mrb[24].mxu0  ;;  %v1153_v28 = vpop.f32.mrb[24].mxu1 }
 0x14b   : > { %v1446_v29 = vadd.f32 %v2186_v17, %v1025_v27  ;;  %v1478_v30 = vadd.f32 %v2186_v17, %v1153_v28  ;;  %v1027_v31 = vpop.f32.mrb[25].mxu0  ;;  %v1155_v32 = vpop.f32.mrb[25].mxu1 }
 0x14c   : > { %v1028_v33 = vpop.f32.mrb[26].mxu0  ;;  %v1156_v34 = vpop.f32.mrb[26].mxu1 }
 0x14d   : > { %1510 = vst [vmem:[%s2193_s9 + $0x60] sm:$0xff] %v1446_v29  ;;  %1542 = vst [vmem:[%s2193_s9 + $0x160] sm:$0xff] %v1478_v30  ;;  %v1447_v35 = vadd.f32 %v2186_v17, %v1028_v33  ;;  %v1479_v36 = vadd.f32 %v2186_v17, %v1156_v34  ;;  %v1030_v37 = vpop.f32.mrb[27].mxu0  ;;  %v1158_v38 = vpop.f32.mrb[27].mxu1 }
 0x14f   : > { %1511 = vst [vmem:[%s2193_s9 + $0x68] sm:$0xff] %v1447_v35  ;;  %1543 = vst [vmem:[%s2193_s9 + $0x168] sm:$0xff] %v1479_v36 }
 0x152   : > { %v1033_v39 = vpop.f32.mrb[28].mxu0  ;;  %v1161_v40 = vpop.f32.mrb[28].mxu1 }
 0x153   : > { %v1448_v41 = vadd.f32 %v2186_v17, %v1033_v39  ;;  %v1480_v42 = vadd.f32 %v2186_v17, %v1161_v40  ;;  %v1035_v43 = vpop.f32.mrb[29].mxu0  ;;  %v1163_v44 = vpop.f32.mrb[29].mxu1 }
 0x154   : > { %v1036_v45 = vpop.f32.mrb[30].mxu0  ;;  %v1164_v46 = vpop.f32.mrb[30].mxu1 }
 0x155   : > { %1512 = vst [vmem:[%s2193_s9 + $0x70] sm:$0xff] %v1448_v41  ;;  %1544 = vst [vmem:[%s2193_s9 + $0x170] sm:$0xff] %v1480_v42  ;;  %v1449_v47 = vadd.f32 %v2186_v17, %v1036_v45  ;;  %v1481_v48 = vadd.f32 %v2186_v17, %v1164_v46  ;;  %v1038_v49 = vpop.f32.mrb[31].mxu0  ;;  %v1166_v50 = vpop.f32.mrb[31].mxu1 }
 0x157   : > { %1513 = vst [vmem:[%s2193_s9 + $0x78] sm:$0xff] %v1449_v47  ;;  %1545 = vst [vmem:[%s2193_s9 + $0x178] sm:$0xff] %v1481_v48 }
 0x15a   : > { %v1041_v51 = vpop.f32.mrb[32].mxu0  ;;  %v1169_v52 = vpop.f32.mrb[32].mxu1 }
 0x15b   : > { %v1450_v53 = vadd.f32 %v2186_v17, %v1041_v51  ;;  %v1482_v54 = vadd.f32 %v2186_v17, %v1169_v52  ;;  %v1043_v55 = vpop.f32.mrb[33].mxu0  ;;  %v1171_v56 = vpop.f32.mrb[33].mxu1 }
 0x15c   : > { %v1044_v57 = vpop.f32.mrb[34].mxu0  ;;  %v1172_v58 = vpop.f32.mrb[34].mxu1 }
 0x15d   : > { %1514 = vst [vmem:[%s2193_s9 + $0x80] sm:$0xff] %v1450_v53  ;;  %1546 = vst [vmem:[%s2193_s9 + $0x180] sm:$0xff] %v1482_v54  ;;  %v1451_v59 = vadd.f32 %v2186_v17, %v1044_v57  ;;  %v1483_v60 = vadd.f32 %v2186_v17, %v1172_v58  ;;  %v1046_v61 = vpop.f32.mrb[35].mxu0  ;;  %v1174_v62 = vpop.f32.mrb[35].mxu1 }
 0x15f   : > { %1515 = vst [vmem:[%s2193_s9 + $0x88] sm:$0xff] %v1451_v59  ;;  %1547 = vst [vmem:[%s2193_s9 + $0x188] sm:$0xff] %v1483_v60 }
 0x162   : > { %v1049_v63 = vpop.f32.mrb[36].mxu0  ;;  %v1177_v0 = vpop.f32.mrb[36].mxu1 }
 0x163   : > { %v1452_v1 = vadd.f32 %v2186_v17, %v1049_v63  ;;  %v1484_v2 = vadd.f32 %v2186_v17, %v1177_v0  ;;  %v1051_v3 = vpop.f32.mrb[37].mxu0  ;;  %v1179_v4 = vpop.f32.mrb[37].mxu1 }
 0x164   : > { %v1052_v5 = vpop.f32.mrb[38].mxu0  ;;  %v1180_v6 = vpop.f32.mrb[38].mxu1 }
 0x165   : > { %1516 = vst [vmem:[%s2193_s9 + $0x90] sm:$0xff] %v1452_v1  ;;  %1548 = vst [vmem:[%s2193_s9 + $0x190] sm:$0xff] %v1484_v2  ;;  %v1453_v7 = vadd.f32 %v2186_v17, %v1052_v5  ;;  %v1485_v8 = vadd.f32 %v2186_v17, %v1180_v6  ;;  %v1054_v9 = vpop.f32.mrb[39].mxu0  ;;  %v1182_v10 = vpop.f32.mrb[39].mxu1 }
 0x167   : > { %1517 = vst [vmem:[%s2193_s9 + $0x98] sm:$0xff] %v1453_v7  ;;  %1549 = vst [vmem:[%s2193_s9 + $0x198] sm:$0xff] %v1485_v8 }
 0x16a   : > { %v1057_v11 = vpop.f32.mrb[40].mxu0  ;;  %v1185_v12 = vpop.f32.mrb[40].mxu1 }
 0x16b   : > { %v1454_v13 = vadd.f32 %v2186_v17, %v1057_v11  ;;  %v1486_v14 = vadd.f32 %v2186_v17, %v1185_v12  ;;  %v1059_v15 = vpop.f32.mrb[41].mxu0  ;;  %v1187_v16 = vpop.f32.mrb[41].mxu1 }
 0x16c   : > { %v1060_v18 = vpop.f32.mrb[42].mxu0  ;;  %v1188_v19 = vpop.f32.mrb[42].mxu1 }
 0x16d   : > { %1518 = vst [vmem:[%s2193_s9 + $0xa0] sm:$0xff] %v1454_v13  ;;  %1550 = vst [vmem:[%s2193_s9 + $0x1a0] sm:$0xff] %v1486_v14  ;;  %v1455_v20 = vadd.f32 %v2186_v17, %v1060_v18  ;;  %v1487_v21 = vadd.f32 %v2186_v17, %v1188_v19  ;;  %v1062_v22 = vpop.f32.mrb[43].mxu0  ;;  %v1190_v23 = vpop.f32.mrb[43].mxu1 }
 0x16f   : > { %1519 = vst [vmem:[%s2193_s9 + $0xa8] sm:$0xff] %v1455_v20  ;;  %1551 = vst [vmem:[%s2193_s9 + $0x1a8] sm:$0xff] %v1487_v21 }
 0x172   : > { %v1065_v24 = vpop.f32.mrb[44].mxu0  ;;  %v1193_v25 = vpop.f32.mrb[44].mxu1 }
 0x173   : > { %v1456_v26 = vadd.f32 %v2186_v17, %v1065_v24  ;;  %v1488_v27 = vadd.f32 %v2186_v17, %v1193_v25  ;;  %v1067_v28 = vpop.f32.mrb[45].mxu0  ;;  %v1195_v29 = vpop.f32.mrb[45].mxu1 }
 0x174   : > { %v1068_v30 = vpop.f32.mrb[46].mxu0  ;;  %v1196_v31 = vpop.f32.mrb[46].mxu1 }
 0x175   : > { %1520 = vst [vmem:[%s2193_s9 + $0xb0] sm:$0xff] %v1456_v26  ;;  %1552 = vst [vmem:[%s2193_s9 + $0x1b0] sm:$0xff] %v1488_v27  ;;  %v1457_v32 = vadd.f32 %v2186_v17, %v1068_v30  ;;  %v1489_v33 = vadd.f32 %v2186_v17, %v1196_v31  ;;  %v1070_v34 = vpop.f32.mrb[47].mxu0  ;;  %v1198_v35 = vpop.f32.mrb[47].mxu1 }
 0x177   : > { %1521 = vst [vmem:[%s2193_s9 + $0xb8] sm:$0xff] %v1457_v32  ;;  %1553 = vst [vmem:[%s2193_s9 + $0x1b8] sm:$0xff] %v1489_v33 }
 0x17a   : > { %v1073_v36 = vpop.f32.mrb[48].mxu0  ;;  %v1201_v37 = vpop.f32.mrb[48].mxu1 }
 0x17b   : > { %v1458_v38 = vadd.f32 %v2186_v17, %v1073_v36  ;;  %v1490_v39 = vadd.f32 %v2186_v17, %v1201_v37  ;;  %v1075_v40 = vpop.f32.mrb[49].mxu0  ;;  %v1203_v41 = vpop.f32.mrb[49].mxu1 }
 0x17c   : > { %v1076_v42 = vpop.f32.mrb[50].mxu0  ;;  %v1204_v43 = vpop.f32.mrb[50].mxu1 }
 0x17d   : > { %1522 = vst [vmem:[%s2193_s9 + $0xc0] sm:$0xff] %v1458_v38  ;;  %1554 = vst [vmem:[%s2193_s9 + $0x1c0] sm:$0xff] %v1490_v39  ;;  %v1459_v44 = vadd.f32 %v2186_v17, %v1076_v42  ;;  %v1491_v45 = vadd.f32 %v2186_v17, %v1204_v43  ;;  %v1078_v46 = vpop.f32.mrb[51].mxu0  ;;  %v1206_v47 = vpop.f32.mrb[51].mxu1 }
 0x17f   : > { %1523 = vst [vmem:[%s2193_s9 + $0xc8] sm:$0xff] %v1459_v44  ;;  %1555 = vst [vmem:[%s2193_s9 + $0x1c8] sm:$0xff] %v1491_v45 }
 0x182   : > { %v1081_v48 = vpop.f32.mrb[52].mxu0  ;;  %v1209_v49 = vpop.f32.mrb[52].mxu1 }
 0x183   : > { %v1460_v50 = vadd.f32 %v2186_v17, %v1081_v48  ;;  %v1492_v51 = vadd.f32 %v2186_v17, %v1209_v49  ;;  %v1083_v52 = vpop.f32.mrb[53].mxu0  ;;  %v1211_v53 = vpop.f32.mrb[53].mxu1 }
 0x184   : > { %v1084_v54 = vpop.f32.mrb[54].mxu0  ;;  %v1212_v55 = vpop.f32.mrb[54].mxu1 }
 0x185   : > { %1524 = vst [vmem:[%s2193_s9 + $0xd0] sm:$0xff] %v1460_v50  ;;  %1556 = vst [vmem:[%s2193_s9 + $0x1d0] sm:$0xff] %v1492_v51  ;;  %v1461_v56 = vadd.f32 %v2186_v17, %v1084_v54  ;;  %v1493_v57 = vadd.f32 %v2186_v17, %v1212_v55  ;;  %v1086_v58 = vpop.f32.mrb[55].mxu0  ;;  %v1214_v59 = vpop.f32.mrb[55].mxu1 }
 0x187   : > { %1525 = vst [vmem:[%s2193_s9 + $0xd8] sm:$0xff] %v1461_v56  ;;  %1557 = vst [vmem:[%s2193_s9 + $0x1d8] sm:$0xff] %v1493_v57 }
 0x18a   : > { %v1089_v60 = vpop.f32.mrb[56].mxu0  ;;  %v1217_v61 = vpop.f32.mrb[56].mxu1 }
 0x18b   : > { %v1462_v62 = vadd.f32 %v2186_v17, %v1089_v60  ;;  %v1494_v63 = vadd.f32 %v2186_v17, %v1217_v61  ;;  %v1091_v0 = vpop.f32.mrb[57].mxu0  ;;  %v1219_v1 = vpop.f32.mrb[57].mxu1 }
 0x18c   : > { %v1092_v2 = vpop.f32.mrb[58].mxu0  ;;  %v1220_v3 = vpop.f32.mrb[58].mxu1 }
 0x18d   : > { %1526 = vst [vmem:[%s2193_s9 + $0xe0] sm:$0xff] %v1462_v62  ;;  %1558 = vst [vmem:[%s2193_s9 + $0x1e0] sm:$0xff] %v1494_v63  ;;  %v1463_v4 = vadd.f32 %v2186_v17, %v1092_v2  ;;  %v1495_v5 = vadd.f32 %v2186_v17, %v1220_v3  ;;  %v1094_v6 = vpop.f32.mrb[59].mxu0  ;;  %v1222_v7 = vpop.f32.mrb[59].mxu1 }
 0x18f   : > { %1527 = vst [vmem:[%s2193_s9 + $0xe8] sm:$0xff] %v1463_v4  ;;  %1559 = vst [vmem:[%s2193_s9 + $0x1e8] sm:$0xff] %v1495_v5 }
 0x192   : > { %v1097_v8 = vpop.f32.mrb[60].mxu0  ;;  %v1225_v9 = vpop.f32.mrb[60].mxu1 }
 0x193   : > { %v1464_v10 = vadd.f32 %v2186_v17, %v1097_v8  ;;  %v1496_v11 = vadd.f32 %v2186_v17, %v1225_v9  ;;  %v1099_v12 = vpop.f32.mrb[61].mxu0  ;;  %v1227_v13 = vpop.f32.mrb[61].mxu1 }
 0x194   : > { %v1100_v14 = vpop.f32.mrb[62].mxu0  ;;  %v1228_v15 = vpop.f32.mrb[62].mxu1 }
 0x195   : > { %1528 = vst [vmem:[%s2193_s9 + $0xf0] sm:$0xff] %v1464_v10  ;;  %1560 = vst [vmem:[%s2193_s9 + $0x1f0] sm:$0xff] %v1496_v11  ;;  %v1465_v16 = vadd.f32 %v2186_v17, %v1100_v14  ;;  %v1497_v18 = vadd.f32 %v2186_v17, %v1228_v15  ;;  %v1102_v19 = vpop.f32.mrb[63].mxu0  ;;  %v1230_v20 = vpop.f32.mrb[63].mxu1 }
 0x197   : > { %1529 = vst [vmem:[%s2193_s9 + $0xf8] sm:$0xff] %v1465_v16  ;;  %1561 = vst [vmem:[%s2193_s9 + $0x1f8] sm:$0xff] %v1497_v18 }
 0x198 PF: > { %s13_s14 = sadd.s32 1, %s1988_s14   ;;  %s2336_s12 = smov %s1984_s13 }
 0x199   : > { %p10_p5 = scmp.ge.s32.totalorder %s13_s14, 18   ;;  %s2337_s13 = smov %s2339_s15 }
 0x19b   :  { %12 = sbr.rel (!%p10_p5) target bundleno = 2 (0x2), region = 76 }

</bundles_post_ra>
